<compile_context>
chip_gen: v7x
topology: tpu7x:2x2x1
jax: 0.10.0
libtpu: 0.0.40
codegen_flags: <defaults>
</compile_context>

<pallas_src>
import numpy as np
import jax
import jax.numpy as jnp
from jax.experimental import pallas as pl
from jax.experimental.pallas import tpu as pltpu


# --------------------------- prep (batched) kernel ---------------------------

def _prep_kernel(src_ref, pos_ref, tgt_ref,
                 enc_w_ref, enc_b_ref, wo_e_ref, bo_ref, wih_ref,
                 ency_ref, xg_ref):
    # Encoder projection + positional embedding add (fused, one VMEM pass).
    enc = (jnp.dot(src_ref[...], enc_w_ref[...],
                   preferred_element_type=jnp.float32)
           + enc_b_ref[...] + pos_ref[...])
    # Encoder half of the concat-linear output projection (+ its bias),
    # hoisted out of the recurrence.
    ency_ref[...] = (jnp.dot(enc, wo_e_ref[...],
                             preferred_element_type=jnp.float32)
                     + bo_ref[...])
    # Teacher-forced input projection x @ W_ih, hoisted out of the recurrence.
    xg_ref[...] = jnp.dot(tgt_ref[...], wih_ref[...],
                          preferred_element_type=jnp.float32)


def pallas_prep(src_flat, pos_rows, tgt_flat, params):
    n = src_flat.shape[0]
    motion = params["wo_e"].shape[1]
    g4 = params["wih"].shape[1]
    vmem = pl.BlockSpec(memory_space=pltpu.MemorySpace.VMEM)
    return pl.pallas_call(
        _prep_kernel,
        out_shape=(jax.ShapeDtypeStruct((n, motion), jnp.float32),
                   jax.ShapeDtypeStruct((n, g4), jnp.float32)),
        in_specs=[vmem] * 8,
        out_specs=(vmem, vmem),
    )(src_flat, pos_rows, tgt_flat,
      params["enc_w"], params["enc_b"], params["wo_e"],
      params["b_out"], params["wih"])


# ------------------------ fused recurrent decoder kernel ---------------------

def _fused_decoder_kernel(mask_ref,                      # scalar prefetch (SMEM)
                          xg_ref, ency_ref, y0_ref, h0_ref, c0_ref,
                          wih_ref, whh_ref, bl_ref, woh_ref,
                          y_out_ref,
                          h_sc, c_sc, y_sc, gx_sc):
    i = pl.program_id(0)
    H = h_sc.shape[-1]

    # Initialise the carried state at the first grid step.
    @pl.when(i == 0)
    def _init():
        h_sc[...] = h0_ref[...]
        c_sc[...] = c0_ref[...]
        y_sc[...] = y0_ref[...]

    m = mask_ref[i]

    # Scheduled sampling: teacher-forced steps use the precomputed x @ W_ih,
    # autoregressive steps project the previous prediction.
    @pl.when(m == 1)
    def _teacher_forced():
        gx_sc[...] = xg_ref[0]

    @pl.when(m != 1)
    def _autoregressive():
        gx_sc[...] = jnp.dot(y_sc[...], wih_ref[...],
                             preferred_element_type=jnp.float32)

    gates = (gx_sc[...]
             + jnp.dot(h_sc[...], whh_ref[...],
                       preferred_element_type=jnp.float32)
             + bl_ref[...])
    i_g = jax.nn.sigmoid(gates[:, 0 * H:1 * H])
    f_g = jax.nn.sigmoid(gates[:, 1 * H:2 * H])
    g_g = jnp.tanh(gates[:, 2 * H:3 * H])
    o_g = jax.nn.sigmoid(gates[:, 3 * H:4 * H])

    c_new = f_g * c_sc[...] + i_g * g_g
    h_new = o_g * jnp.tanh(c_new)

    # y = concat([h_new, enc_i]) @ W_out + b_out, with the enc/bias half
    # precomputed (ency_ref).
    y = (jnp.dot(h_new, woh_ref[...], preferred_element_type=jnp.float32)
         + ency_ref[0])

    h_sc[...] = h_new
    c_sc[...] = c_new
    y_sc[...] = y
    y_out_ref[0] = y


def pallas_decoder_fused(mask, xg_tf, enc_y, y0, h0, c0, params):
    T, BP, G4 = xg_tf.shape
    H = h0.shape[-1]
    MOT = y0.shape[-1]

    grid_spec = pltpu.PrefetchScalarGridSpec(
        num_scalar_prefetch=1,
        grid=(T,),
        in_specs=[
            # per-step, time-major slabs
            pl.BlockSpec((1, BP, G4), lambda i, m: (i, 0, 0)),    # xg_tf
            pl.BlockSpec((1, BP, MOT), lambda i, m: (i, 0, 0)),   # enc_proj
            # initial state (only read at step 0, stays resident)
            pl.BlockSpec((BP, MOT), lambda i, m: (0, 0)),         # y0
            pl.BlockSpec((BP, H), lambda i, m: (0, 0)),           # h0
            pl.BlockSpec((BP, H), lambda i, m: (0, 0)),           # c0
            # weights: constant index_map -> VMEM-resident across all steps
            pl.BlockSpec((MOT, G4), lambda i, m: (0, 0)),         # wih
            pl.BlockSpec((H, G4), lambda i, m: (0, 0)),           # whh
            pl.BlockSpec((1, G4), lambda i, m: (0, 0)),           # b_lstm
            pl.BlockSpec((H, MOT), lambda i, m: (0, 0)),          # wo_h
        ],
        out_specs=pl.BlockSpec((1, BP, MOT), lambda i, m: (i, 0, 0)),
        scratch_shapes=[
            pltpu.VMEM((BP, H), jnp.float32),     # h carry
            pltpu.VMEM((BP, H), jnp.float32),     # c carry
            pltpu.VMEM((BP, MOT), jnp.float32),   # previous output carry
            pltpu.VMEM((BP, G4), jnp.float32),    # gate-x scratch
        ],
    )

    return pl.pallas_call(
        _fused_decoder_kernel,
        out_shape=jax.ShapeDtypeStruct((T, BP, MOT), jnp.float32),
        grid_spec=grid_spec,
        compiler_params=pltpu.CompilerParams(
            dimension_semantics=("arbitrary",)),
    )(mask, xg_tf, enc_y, y0, h0, c0,
      params["wih"], params["whh"], params["b_lstm"], params["wo_h"])


# ------------------------------ jitted forward -------------------------------

@jax.jit
def _forward_impl(params, src_seq, src_pos, tgt_seq, vec_h, vec_c,
                  dec_output0, mask):
    B, T, F = src_seq.shape
    motion = tgt_seq.shape[-1]
    H = vec_h.shape[-1]
    N = B * T

    # Positional-embedding gather is glue (plain XLA); the add is fused
    # into the prep kernel.
    pos_rows = jnp.take(params["pos_emb"], src_pos.reshape(N), axis=0)
    src_flat = src_seq.reshape(N, F)
    tgt_flat = tgt_seq.reshape(N, motion)

    enc_y_flat, xg_flat = pallas_prep(src_flat, pos_rows, tgt_flat, params)

    # Time-major, batch-padded layout for the recurrent kernel
    # (pad batch to a full 8-row sublane tile).
    BP = ((B + 7) // 8) * 8

    def to_time_major(x_flat, d):
        x = x_flat.reshape(B, T, d).transpose(1, 0, 2)        # (T, B, d)
        if BP != B:
            x = jnp.pad(x, ((0, 0), (0, BP - B), (0, 0)))
        return x

    enc_y = to_time_major(enc_y_flat, motion)
    xg_tf = to_time_major(xg_flat, 4 * H)

    def pad_rows(x):
        return jnp.pad(x, ((0, BP - B), (0, 0))) if BP != B else x

    h0 = pad_rows(vec_h)
    c0 = pad_rows(vec_c)
    y0 = pad_rows(dec_output0)

    y_out = pallas_decoder_fused(mask, xg_tf, enc_y, y0, h0, c0, params)
    return y_out[:, :B].transpose(1, 0, 2)                    # (B, T, motion)


# ------------------------------- model wrapper --------------------------------

class PallasSeq2Seq:
    """JAX/Pallas port of the PyTorch `Model.forward`."""

    def __init__(self, music_feat, d_model, hidden_size, motion_size,
                 max_len=64, condition_step=10, lambda_v=0.01, seed=0):
        self.d_model = d_model
        self.hidden_size = hidden_size
        self.motion_size = motion_size
        self.condition_step = condition_step
        self.lambda_v = lambda_v

        key = jax.random.PRNGKey(seed)
        ks = jax.random.split(key, 10)

        def init(k, shape, scale=0.1):
            return (scale * jax.random.normal(k, shape)).astype(jnp.float32)

        self.params = {
            # Encoder: linear projection + positional embedding table.
            "enc_w": init(ks[0], (music_feat, d_model)),
            "enc_b": init(ks[1], (1, d_model)),
            "pos_emb": init(ks[2], (max_len, d_model)),
            # Decoder: single-layer LSTM cell (input = motion_size).
            "wih": init(ks[3], (motion_size, 4 * hidden_size)),
            "whh": init(ks[4], (hidden_size, 4 * hidden_size)),
            "b_lstm": init(ks[5], (1, 4 * hidden_size)),
            # Output linear over concat([h, enc]) -> motion_size, split into
            # the hidden-part and encoder-part weight slabs (+ shared bias).
            "wo_h": init(ks[6], (hidden_size, motion_size)),
            "wo_e": init(ks[7], (d_model, motion_size)),
            "b_out": init(ks[8], (1, motion_size)),
        }

    def forward(self, src_seq, src_pos, tgt_seq, hidden, dec_output, out_seq,
                epoch_i=0):
        B, seq_len, _ = tgt_seq.shape
        vec_h, vec_c = hidden

        # Scheduled-sampling mask (static, host-side — matches the torch code).
        groundtruth_mask = np.ones((seq_len, self.condition_step))
        prediction_mask = np.zeros((seq_len, int(epoch_i * self.lambda_v)))
        mask_np = np.concatenate([prediction_mask, groundtruth_mask],
                                 axis=1).reshape(-1)[:seq_len]
        mask = jnp.asarray(mask_np, dtype=jnp.int32)

        return _forward_impl(self.params, src_seq, src_pos, tgt_seq,
                             vec_h, vec_c, dec_output, mask)


# ----------------------------------- main -------------------------------------

if __name__ == "__main__":
    B = 2            # batch
    T = 8            # sequence length
    MUSIC_FEAT = 16  # encoder input feature dim
    D_MODEL = 32     # encoder output dim
    HIDDEN = 32      # decoder (LSTM) hidden size  (4H = 128 -> one vreg of gates)
    MOTION = 16      # decoder motion size (model output dim)
    EPOCH_I = 100    # -> int(100 * 0.01) = 1 prediction-mask column

    model = PallasSeq2Seq(MUSIC_FEAT, D_MODEL, HIDDEN, MOTION,
                          max_len=T, condition_step=10, lambda_v=0.01, seed=0)

    key = jax.random.PRNGKey(0)
    k1, k2, k3, k4, k5 = jax.random.split(key, 5)
    src_seq = jax.random.normal(k1, (B, T, MUSIC_FEAT), dtype=jnp.float32)
    src_pos = jnp.tile(jnp.arange(T, dtype=jnp.int32)[None, :], (B, 1))
    tgt_seq = jax.random.normal(k2, (B, T, MOTION), dtype=jnp.float32)
    vec_h = jax.random.normal(k3, (B, HIDDEN), dtype=jnp.float32)
    vec_c = jax.random.normal(k4, (B, HIDDEN), dtype=jnp.float32)
    dec_output0 = jax.random.normal(k5, (B, MOTION), dtype=jnp.float32)
    out_seq = jnp.zeros((B, T, MOTION), dtype=jnp.float32)  # unused by forward

    outputs = model.forward(src_seq, src_pos, tgt_seq, (vec_h, vec_c),
                            dec_output0, out_seq, epoch_i=EPOCH_I)
    outputs = jax.block_until_ready(outputs)

    assert outputs.shape == (B, T, MOTION)
    assert bool(jnp.all(jnp.isfinite(outputs)))
    print("KERNEL_OK")
</pallas_src>

<mosaic_0001>
module attributes {stable_mosaic.version = 11 : i64} {
  func.func @_prep_kernel(%arg0: memref<16x16xf32, #tpu.memory_space<vmem>>, %arg1: memref<16x32xf32, #tpu.memory_space<vmem>>, %arg2: memref<16x16xf32, #tpu.memory_space<vmem>>, %arg3: memref<16x32xf32, #tpu.memory_space<vmem>>, %arg4: memref<1x32xf32, #tpu.memory_space<vmem>>, %arg5: memref<32x16xf32, #tpu.memory_space<vmem>>, %arg6: memref<1x16xf32, #tpu.memory_space<vmem>>, %arg7: memref<16x128xf32, #tpu.memory_space<vmem>>, %arg8: memref<16x16xf32, #tpu.memory_space<vmem>>, %arg9: memref<16x128xf32, #tpu.memory_space<vmem>>) attributes {dimension_semantics = [], scalar_prefetch = 0 : i64, scratch_operands = 0 : i64, tpu.core_type = #tpu.core_type<tc>} {
    %c0 = arith.constant 0 : index
    %c0_0 = arith.constant 0 : index
    %0 = vector.load %arg0[%c0, %c0_0] : memref<16x16xf32, #tpu.memory_space<vmem>>, vector<16x16xf32>
    %c0_1 = arith.constant 0 : index
    %c0_2 = arith.constant 0 : index
    %1 = vector.load %arg3[%c0_1, %c0_2] : memref<16x32xf32, #tpu.memory_space<vmem>>, vector<16x32xf32>
    %cst = arith.constant dense<0.000000e+00> : vector<16x32xf32>
    %2 = tpu.matmul %0, %1, %cst {dimension_numbers = #tpu.dot_dimension_numbers<[1], [0], [0], [1], [0, 0, 1, 1], [], []>} : vector<16x16xf32>, vector<16x32xf32>, vector<16x32xf32> -> vector<16x32xf32>
    %c0_3 = arith.constant 0 : index
    %c0_4 = arith.constant 0 : index
    %3 = vector.load %arg4[%c0_3, %c0_4] : memref<1x32xf32, #tpu.memory_space<vmem>>, vector<1x32xf32>
    %4 = vector.broadcast %3 : vector<1x32xf32> to vector<16x32xf32>
    %5 = arith.addf %2, %4 : vector<16x32xf32>
    %c0_5 = arith.constant 0 : index
    %c0_6 = arith.constant 0 : index
    %6 = vector.load %arg1[%c0_5, %c0_6] : memref<16x32xf32, #tpu.memory_space<vmem>>, vector<16x32xf32>
    %7 = arith.addf %5, %6 : vector<16x32xf32>
    %c0_7 = arith.constant 0 : index
    %c0_8 = arith.constant 0 : index
    %8 = vector.load %arg5[%c0_7, %c0_8] : memref<32x16xf32, #tpu.memory_space<vmem>>, vector<32x16xf32>
    %cst_9 = arith.constant dense<0.000000e+00> : vector<16x16xf32>
    %9 = tpu.matmul %7, %8, %cst_9 {dimension_numbers = #tpu.dot_dimension_numbers<[1], [0], [0], [1], [0, 0, 1, 1], [], []>} : vector<16x32xf32>, vector<32x16xf32>, vector<16x16xf32> -> vector<16x16xf32>
    %c0_10 = arith.constant 0 : index
    %c0_11 = arith.constant 0 : index
    %10 = vector.load %arg6[%c0_10, %c0_11] : memref<1x16xf32, #tpu.memory_space<vmem>>, vector<1x16xf32>
    %11 = vector.broadcast %10 : vector<1x16xf32> to vector<16x16xf32>
    %12 = arith.addf %9, %11 : vector<16x16xf32>
    %c0_12 = arith.constant 0 : index
    %c0_13 = arith.constant 0 : index
    %13 = vector.load %arg8[%c0_12, %c0_13] : memref<16x16xf32, #tpu.memory_space<vmem>>, vector<16x16xf32>
    tpu.vector_store %arg8[%c0_12, %c0_13], %12 {strides = array<i32>} : memref<16x16xf32, #tpu.memory_space<vmem>>, vector<16x16xf32>,
    %c0_14 = arith.constant 0 : index
    %c0_15 = arith.constant 0 : index
    %14 = vector.load %arg2[%c0_14, %c0_15] : memref<16x16xf32, #tpu.memory_space<vmem>>, vector<16x16xf32>
    %c0_16 = arith.constant 0 : index
    %c0_17 = arith.constant 0 : index
    %15 = vector.load %arg7[%c0_16, %c0_17] : memref<16x128xf32, #tpu.memory_space<vmem>>, vector<16x128xf32>
    %cst_18 = arith.constant dense<0.000000e+00> : vector<16x128xf32>
    %16 = tpu.matmul %14, %15, %cst_18 {dimension_numbers = #tpu.dot_dimension_numbers<[1], [0], [0], [1], [0, 0, 1, 1], [], []>} : vector<16x16xf32>, vector<16x128xf32>, vector<16x128xf32> -> vector<16x128xf32>
    %c0_19 = arith.constant 0 : index
    %c0_20 = arith.constant 0 : index
    %17 = vector.load %arg9[%c0_19, %c0_20] : memref<16x128xf32, #tpu.memory_space<vmem>>, vector<16x128xf32>
    tpu.vector_store %arg9[%c0_19, %c0_20], %16 {strides = array<i32>} : memref<16x128xf32, #tpu.memory_space<vmem>>, vector<16x128xf32>,
    return
  }
}

module attributes {stable_mosaic.version = 11 : i64} {
  func.func @_fused_decoder_kernel(%arg0: i32, %arg1: memref<8xi32, #tpu.memory_space<smem>>, %arg2: memref<1x8x128xf32, #tpu.memory_space<vmem>>, %arg3: memref<1x8x16xf32, #tpu.memory_space<vmem>>, %arg4: memref<8x16xf32, #tpu.memory_space<vmem>>, %arg5: memref<8x32xf32, #tpu.memory_space<vmem>>, %arg6: memref<8x32xf32, #tpu.memory_space<vmem>>, %arg7: memref<16x128xf32, #tpu.memory_space<vmem>>, %arg8: memref<32x128xf32, #tpu.memory_space<vmem>>, %arg9: memref<1x128xf32, #tpu.memory_space<vmem>>, %arg10: memref<32x16xf32, #tpu.memory_space<vmem>>, %arg11: memref<1x8x16xf32, #tpu.memory_space<vmem>>, %arg12: memref<8x32xf32, #tpu.memory_space<vmem>>, %arg13: memref<8x32xf32, #tpu.memory_space<vmem>>, %arg14: memref<8x16xf32, #tpu.memory_space<vmem>>, %arg15: memref<8x128xf32, #tpu.memory_space<vmem>>) attributes {dimension_semantics = [#tpu.dimension_semantics<arbitrary>], iteration_bounds = array<i64: 8>, scalar_prefetch = 1 : i64, scratch_operands = 4 : i64, tpu.core_type = #tpu.core_type<tc>, window_params = [{transform_indices = @transform_0, window_bounds = array<i64: 1, 8, 128>}, {transform_indices = @transform_1, window_bounds = array<i64: 1, 8, 16>}, {pipeline_mode = #tpu.pipeline_mode<synchronous>, transform_indices = @transform_2, window_bounds = array<i64: 8, 16>}, {pipeline_mode = #tpu.pipeline_mode<synchronous>, transform_indices = @transform_3, window_bounds = array<i64: 8, 32>}, {pipeline_mode = #tpu.pipeline_mode<synchronous>, transform_indices = @transform_4, window_bounds = array<i64: 8, 32>}, {pipeline_mode = #tpu.pipeline_mode<synchronous>, transform_indices = @transform_5, window_bounds = array<i64: 16, 128>}, {pipeline_mode = #tpu.pipeline_mode<synchronous>, transform_indices = @transform_6, window_bounds = array<i64: 32, 128>}, {pipeline_mode = #tpu.pipeline_mode<synchronous>, transform_indices = @transform_7, window_bounds = array<i64: 1, 128>}, {pipeline_mode = #tpu.pipeline_mode<synchronous>, transform_indices = @transform_8, window_bounds = array<i64: 32, 16>}, {transform_indices = @transform_9, window_bounds = array<i64: 1, 8, 16>}]} {
    %c0_i32 = arith.constant 0 : i32
    %0 = arith.cmpi eq, %arg0, %c0_i32 : i32
    %1 = arith.extui %0 : i1 to i32
    %c0_i32_0 = arith.constant 0 : i32
    %2 = arith.cmpi ne, %1, %c0_i32_0 : i32
    scf.if %2 {
      %c0_31 = arith.constant 0 : index
      %c0_32 = arith.constant 0 : index
      %56 = vector.load %arg5[%c0_31, %c0_32] : memref<8x32xf32, #tpu.memory_space<vmem>>, vector<8x32xf32>
      %c0_33 = arith.constant 0 : index
      %c0_34 = arith.constant 0 : index
      %57 = vector.load %arg12[%c0_33, %c0_34] : memref<8x32xf32, #tpu.memory_space<vmem>>, vector<8x32xf32>
      tpu.vector_store %arg12[%c0_33, %c0_34], %56 {strides = array<i32>} : memref<8x32xf32, #tpu.memory_space<vmem>>, vector<8x32xf32>,
      %c0_35 = arith.constant 0 : index
      %c0_36 = arith.constant 0 : index
      %58 = vector.load %arg6[%c0_35, %c0_36] : memref<8x32xf32, #tpu.memory_space<vmem>>, vector<8x32xf32>
      %c0_37 = arith.constant 0 : index
      %c0_38 = arith.constant 0 : index
      %59 = vector.load %arg13[%c0_37, %c0_38] : memref<8x32xf32, #tpu.memory_space<vmem>>, vector<8x32xf32>
      tpu.vector_store %arg13[%c0_37, %c0_38], %58 {strides = array<i32>} : memref<8x32xf32, #tpu.memory_space<vmem>>, vector<8x32xf32>,
      %c0_39 = arith.constant 0 : index
      %c0_40 = arith.constant 0 : index
      %60 = vector.load %arg4[%c0_39, %c0_40] : memref<8x16xf32, #tpu.memory_space<vmem>>, vector<8x16xf32>
      %c0_41 = arith.constant 0 : index
      %c0_42 = arith.constant 0 : index
      %61 = vector.load %arg14[%c0_41, %c0_42] : memref<8x16xf32, #tpu.memory_space<vmem>>, vector<8x16xf32>
      tpu.vector_store %arg14[%c0_41, %c0_42], %60 {strides = array<i32>} : memref<8x16xf32, #tpu.memory_space<vmem>>, vector<8x16xf32>,
    } else {
    }
    %3 = arith.index_cast %arg0 : i32 to index
    %4 = memref.load %arg1[%3] : memref<8xi32, #tpu.memory_space<smem>>
    %c1_i32 = arith.constant 1 : i32
    %5 = arith.cmpi eq, %4, %c1_i32 : i32
    %6 = arith.extui %5 : i1 to i32
    %c0_i32_1 = arith.constant 0 : i32
    %7 = arith.cmpi ne, %6, %c0_i32_1 : i32
    scf.if %7 {
      %c0_31 = arith.constant 0 : index
      %c0_32 = arith.constant 0 : index
      %c0_33 = arith.constant 0 : index
      %56 = vector.load %arg2[%c0_31, %c0_32, %c0_33] : memref<1x8x128xf32, #tpu.memory_space<vmem>>, vector<1x8x128xf32>
      %57 = vector.shape_cast %56 : vector<1x8x128xf32> to vector<8x128xf32>
      %c0_34 = arith.constant 0 : index
      %c0_35 = arith.constant 0 : index
      %58 = vector.load %arg15[%c0_34, %c0_35] : memref<8x128xf32, #tpu.memory_space<vmem>>, vector<8x128xf32>
      tpu.vector_store %arg15[%c0_34, %c0_35], %57 {strides = array<i32>} : memref<8x128xf32, #tpu.memory_space<vmem>>, vector<8x128xf32>,
    } else {
    }
    %c1_i32_2 = arith.constant 1 : i32
    %8 = arith.cmpi ne, %4, %c1_i32_2 : i32
    %9 = arith.extui %8 : i1 to i32
    %c0_i32_3 = arith.constant 0 : i32
    %10 = arith.cmpi ne, %9, %c0_i32_3 : i32
    scf.if %10 {
      %c0_31 = arith.constant 0 : index
      %c0_32 = arith.constant 0 : index
      %56 = vector.load %arg14[%c0_31, %c0_32] : memref<8x16xf32, #tpu.memory_space<vmem>>, vector<8x16xf32>
      %c0_33 = arith.constant 0 : index
      %c0_34 = arith.constant 0 : index
      %57 = vector.load %arg7[%c0_33, %c0_34] : memref<16x128xf32, #tpu.memory_space<vmem>>, vector<16x128xf32>
      %cst_35 = arith.constant dense<0.000000e+00> : vector<8x128xf32>
      %58 = tpu.matmul %56, %57, %cst_35 {dimension_numbers = #tpu.dot_dimension_numbers<[1], [0], [0], [1], [0, 0, 1, 1], [], []>} : vector<8x16xf32>, vector<16x128xf32>, vector<8x128xf32> -> vector<8x128xf32>
      %c0_36 = arith.constant 0 : index
      %c0_37 = arith.constant 0 : index
      %59 = vector.load %arg15[%c0_36, %c0_37] : memref<8x128xf32, #tpu.memory_space<vmem>>, vector<8x128xf32>
      tpu.vector_store %arg15[%c0_36, %c0_37], %58 {strides = array<i32>} : memref<8x128xf32, #tpu.memory_space<vmem>>, vector<8x128xf32>,
    } else {
    }
    %c0 = arith.constant 0 : index
    %c0_4 = arith.constant 0 : index
    %11 = vector.load %arg15[%c0, %c0_4] : memref<8x128xf32, #tpu.memory_space<vmem>>, vector<8x128xf32>
    %c0_5 = arith.constant 0 : index
    %c0_6 = arith.constant 0 : index
    %12 = vector.load %arg12[%c0_5, %c0_6] : memref<8x32xf32, #tpu.memory_space<vmem>>, vector<8x32xf32>
    %c0_7 = arith.constant 0 : index
    %c0_8 = arith.constant 0 : index
    %13 = vector.load %arg8[%c0_7, %c0_8] : memref<32x128xf32, #tpu.memory_space<vmem>>, vector<32x128xf32>
    %cst = arith.constant dense<0.000000e+00> : vector<8x128xf32>
    %14 = tpu.matmul %12, %13, %cst {dimension_numbers = #tpu.dot_dimension_numbers<[1], [0], [0], [1], [0, 0, 1, 1], [], []>} : vector<8x32xf32>, vector<32x128xf32>, vector<8x128xf32> -> vector<8x128xf32>
    %15 = arith.addf %11, %14 : vector<8x128xf32>
    %c0_9 = arith.constant 0 : index
    %c0_10 = arith.constant 0 : index
    %16 = vector.load %arg9[%c0_9, %c0_10] : memref<1x128xf32, #tpu.memory_space<vmem>>, vector<1x128xf32>
    %17 = vector.broadcast %16 : vector<1x128xf32> to vector<8x128xf32>
    %18 = arith.addf %15, %17 : vector<8x128xf32>
    %19 = vector.extract_strided_slice %18 {offsets = [0, 0], sizes = [8, 32], strides = [1, 1]} : vector<8x128xf32> to vector<8x32xf32>
    %20 = arith.negf %19 : vector<8x32xf32>
    %21 = math.exp %20 : vector<8x32xf32>
    %cst_11 = arith.constant 1.000000e+00 : f32
    %22 = vector.broadcast %cst_11 : f32 to vector<8x32xf32>
    %23 = arith.addf %22, %21 : vector<8x32xf32>
    %24 = arith.divf %22, %23 : vector<8x32xf32>
    %25 = vector.extract_strided_slice %18 {offsets = [0, 32], sizes = [8, 32], strides = [1, 1]} : vector<8x128xf32> to vector<8x32xf32>
    %26 = arith.negf %25 : vector<8x32xf32>
    %27 = math.exp %26 : vector<8x32xf32>
    %cst_12 = arith.constant 1.000000e+00 : f32
    %28 = vector.broadcast %cst_12 : f32 to vector<8x32xf32>
    %29 = arith.addf %28, %27 : vector<8x32xf32>
    %30 = arith.divf %28, %29 : vector<8x32xf32>
    %31 = vector.extract_strided_slice %18 {offsets = [0, 64], sizes = [8, 32], strides = [1, 1]} : vector<8x128xf32> to vector<8x32xf32>
    %32 = math.tanh %31 : vector<8x32xf32>
    %33 = vector.extract_strided_slice %18 {offsets = [0, 96], sizes = [8, 32], strides = [1, 1]} : vector<8x128xf32> to vector<8x32xf32>
    %34 = arith.negf %33 : vector<8x32xf32>
    %35 = math.exp %34 : vector<8x32xf32>
    %cst_13 = arith.constant 1.000000e+00 : f32
    %36 = vector.broadcast %cst_13 : f32 to vector<8x32xf32>
    %37 = arith.addf %36, %35 : vector<8x32xf32>
    %38 = arith.divf %36, %37 : vector<8x32xf32>
    %c0_14 = arith.constant 0 : index
    %c0_15 = arith.constant 0 : index
    %39 = vector.load %arg13[%c0_14, %c0_15] : memref<8x32xf32, #tpu.memory_space<vmem>>, vector<8x32xf32>
    %40 = arith.mulf %30, %39 : vector<8x32xf32>
    %41 = arith.mulf %24, %32 : vector<8x32xf32>
    %42 = arith.addf %40, %41 : vector<8x32xf32>
    %43 = math.tanh %42 : vector<8x32xf32>
    %44 = arith.mulf %38, %43 : vector<8x32xf32>
    %c0_16 = arith.constant 0 : index
    %c0_17 = arith.constant 0 : index
    %45 = vector.load %arg10[%c0_16, %c0_17] : memref<32x16xf32, #tpu.memory_space<vmem>>, vector<32x16xf32>
    %cst_18 = arith.constant dense<0.000000e+00> : vector<8x16xf32>
    %46 = tpu.matmul %44, %45, %cst_18 {dimension_numbers = #tpu.dot_dimension_numbers<[1], [0], [0], [1], [0, 0, 1, 1], [], []>} : vector<8x32xf32>, vector<32x16xf32>, vector<8x16xf32> -> vector<8x16xf32>
    %c0_19 = arith.constant 0 : index
    %c0_20 = arith.constant 0 : index
    %c0_21 = arith.constant 0 : index
    %47 = vector.load %arg3[%c0_19, %c0_20, %c0_21] : memref<1x8x16xf32, #tpu.memory_space<vmem>>, vector<1x8x16xf32>
    %48 = vector.shape_cast %47 : vector<1x8x16xf32> to vector<8x16xf32>
    %49 = arith.addf %46, %48 : vector<8x16xf32>
    %c0_22 = arith.constant 0 : index
    %c0_23 = arith.constant 0 : index
    %50 = vector.load %arg12[%c0_22, %c0_23] : memref<8x32xf32, #tpu.memory_space<vmem>>, vector<8x32xf32>
    tpu.vector_store %arg12[%c0_22, %c0_23], %44 {strides = array<i32>} : memref<8x32xf32, #tpu.memory_space<vmem>>, vector<8x32xf32>,
    %c0_24 = arith.constant 0 : index
    %c0_25 = arith.constant 0 : index
    %51 = vector.load %arg13[%c0_24, %c0_25] : memref<8x32xf32, #tpu.memory_space<vmem>>, vector<8x32xf32>
    tpu.vector_store %arg13[%c0_24, %c0_25], %42 {strides = array<i32>} : memref<8x32xf32, #tpu.memory_space<vmem>>, vector<8x32xf32>,
    %c0_26 = arith.constant 0 : index
    %c0_27 = arith.constant 0 : index
    %52 = vector.load %arg14[%c0_26, %c0_27] : memref<8x16xf32, #tpu.memory_space<vmem>>, vector<8x16xf32>
    tpu.vector_store %arg14[%c0_26, %c0_27], %49 {strides = array<i32>} : memref<8x16xf32, #tpu.memory_space<vmem>>, vector<8x16xf32>,
    %c0_28 = arith.constant 0 : index
    %c0_29 = arith.constant 0 : index
    %c0_30 = arith.constant 0 : index
    %53 = vector.load %arg11[%c0_28, %c0_29, %c0_30] : memref<1x8x16xf32, #tpu.memory_space<vmem>>, vector<1x8x16xf32>
    %54 = vector.shape_cast %53 : vector<1x8x16xf32> to vector<8x16xf32>
    %55 = vector.shape_cast %49 : vector<8x16xf32> to vector<1x8x16xf32>
    tpu.vector_store %arg11[%c0_28, %c0_29, %c0_30], %55 {strides = array<i32>} : memref<1x8x16xf32, #tpu.memory_space<vmem>>, vector<1x8x16xf32>,
    return
  }
  func.func @transform_0(%arg0: i32, %arg1: memref<8xi32, #tpu.memory_space<smem>>) -> (i32, i32, i32) {
    %c0_i32 = arith.constant 0 : i32
    %c0_i32_0 = arith.constant 0 : i32
    %c0_i32_1 = arith.constant 0 : i32
    return %arg0, %c0_i32, %c0_i32_0 : i32, i32, i32
  }
  func.func @transform_1(%arg0: i32, %arg1: memref<8xi32, #tpu.memory_space<smem>>) -> (i32, i32, i32) {
    %c0_i32 = arith.constant 0 : i32
    %c0_i32_0 = arith.constant 0 : i32
    %c0_i32_1 = arith.constant 0 : i32
    return %arg0, %c0_i32, %c0_i32_0 : i32, i32, i32
  }
  func.func @transform_2(%arg0: i32, %arg1: memref<8xi32, #tpu.memory_space<smem>>) -> (i32, i32) {
    %c0_i32 = arith.constant 0 : i32
    %c0_i32_0 = arith.constant 0 : i32
    %c0_i32_1 = arith.constant 0 : i32
    return %c0_i32, %c0_i32_0 : i32, i32
  }
  func.func @transform_3(%arg0: i32, %arg1: memref<8xi32, #tpu.memory_space<smem>>) -> (i32, i32) {
    %c0_i32 = arith.constant 0 : i32
    %c0_i32_0 = arith.constant 0 : i32
    %c0_i32_1 = arith.constant 0 : i32
    return %c0_i32, %c0_i32_0 : i32, i32
  }
  func.func @transform_4(%arg0: i32, %arg1: memref<8xi32, #tpu.memory_space<smem>>) -> (i32, i32) {
    %c0_i32 = arith.constant 0 : i32
    %c0_i32_0 = arith.constant 0 : i32
    %c0_i32_1 = arith.constant 0 : i32
    return %c0_i32, %c0_i32_0 : i32, i32
  }
  func.func @transform_5(%arg0: i32, %arg1: memref<8xi32, #tpu.memory_space<smem>>) -> (i32, i32) {
    %c0_i32 = arith.constant 0 : i32
    %c0_i32_0 = arith.constant 0 : i32
    %c0_i32_1 = arith.constant 0 : i32
    return %c0_i32, %c0_i32_0 : i32, i32
  }
  func.func @transform_6(%arg0: i32, %arg1: memref<8xi32, #tpu.memory_space<smem>>) -> (i32, i32) {
    %c0_i32 = arith.constant 0 : i32
    %c0_i32_0 = arith.constant 0 : i32
    %c0_i32_1 = arith.constant 0 : i32
    return %c0_i32, %c0_i32_0 : i32, i32
  }
  func.func @transform_7(%arg0: i32, %arg1: memref<8xi32, #tpu.memory_space<smem>>) -> (i32, i32) {
    %c0_i32 = arith.constant 0 : i32
    %c0_i32_0 = arith.constant 0 : i32
    %c0_i32_1 = arith.constant 0 : i32
    return %c0_i32, %c0_i32_0 : i32, i32
  }
  func.func @transform_8(%arg0: i32, %arg1: memref<8xi32, #tpu.memory_space<smem>>) -> (i32, i32) {
    %c0_i32 = arith.constant 0 : i32
    %c0_i32_0 = arith.constant 0 : i32
    %c0_i32_1 = arith.constant 0 : i32
    return %c0_i32, %c0_i32_0 : i32, i32
  }
  func.func @transform_9(%arg0: i32, %arg1: memref<8xi32, #tpu.memory_space<smem>>) -> (i32, i32, i32) {
    %c0_i32 = arith.constant 0 : i32
    %c0_i32_0 = arith.constant 0 : i32
    %c0_i32_1 = arith.constant 0 : i32
    return %arg0, %c0_i32, %c0_i32_0 : i32, i32, i32
  }
}

</mosaic_0001>

<bundles_post_ra>
// kernel: _forward_impl.2
= control target key start
LH: loop header
LB: loop body
LE: loop exit
PB: predicated region body
PF: predicated region fallthrough
CT: control target
= control target key end

     0   :  { %vm42_vm0 = vcmask 130048   ;;  %vm139_vm1 = vcmask 261120   ;;  %s497_s3 = inlined_call_operand.vmem [shape: f32[16,32], index: 3, kind: input, shape index: {}]   ;;  %s498_s0 = inlined_call_operand.vmem [shape: f32[16,16], index: 0, kind: input, shape index: {}]   ;;  %s499_s5 = inlined_call_operand.vmem [shape: f32[32,16], index: 5, kind: input, shape index: {}]   ;;  %s500_s7 = inlined_call_operand.vmem [shape: f32[16,128], index: 7, kind: input, shape index: {}]   ;;  %s501_s2 = inlined_call_operand.vmem [shape: f32[16,16], index: 2, kind: input, shape index: {}]   ;;  %s502_s4 = inlined_call_operand.vmem [shape: f32[1,32], index: 4, kind: input, shape index: {}]   ;;  %s503_s1 = inlined_call_operand.vmem [shape: f32[16,32], index: 1, kind: input, shape index: {}]   ;;  %s504_s9 = inlined_call_operand.vmem [shape: f32[16,128], index: 9, kind: output, shape index: {1}]   ;;  %s505_s6 = inlined_call_operand.vmem [shape: f32[1,16], index: 6, kind: input, shape index: {}]   ;;  %s506_s8 = inlined_call_operand.vmem [shape: f32[16,16], index: 8, kind: output, shape index: {0}]  }
   0x1   :  { %v33_v0 = vld [vmem:[%s497_s3] sm:$0xff]  ;;  %v34_v1 = vld [vmem:[%s497_s3 + $0x8] sm:$0xff]  ;;  %v130_v8 = vld [vmem:[%s499_s5 + $0x10] sm:$0xff] }
   0x2   :  { %v31_v2 = vld [vmem:[%s498_s0] sm:$0xff]  ;;  %v365_v3 = vpack.c.bf16 %v34_v1, %v33_v0  ;;  %v129_v5 = vld [vmem:[%s499_s5 + $0x8] sm:$0xff]  ;;  %v131_v9 = vld [vmem:[%s499_s5 + $0x18] sm:$0xff] }
   0x3   :  { %344 = vmatprep.mubr.msk.f32.mxu0 %vm42_vm0, %v31_v2  ;;  %v128_v4 = vld [vmem:[%s499_s5] sm:$0xff]  ;;  %v32_v7 = vld [vmem:[%s498_s0 + $0x8] sm:$0xff]  ;;  %v373_v10 = vpack.c.bf16 %v131_v9, %v130_v8 }
   0x4   :  { %v369_v6 = vpack.c.bf16 %v129_v5, %v128_v4  ;;  %366 = vmatprep.subr.bf16.mxu0 %v365_v3  ;;  %v225_v11 = vld [vmem:[%s500_s7] sm:$0xff]  ;;  %v226_v12 = vld [vmem:[%s500_s7 + $0x8] sm:$0xff] }
   0x5   :  { %368 = vmatpush3.bf16.msra.mxu0 %v365_v3  ;;  %v377_v13 = vpack.c.bf16 %v226_v12, %v225_v11  ;;  %v223_v14 = vld [vmem:[%s501_s2] sm:$0xff]  ;;  %v224_v15 = vld [vmem:[%s501_s2 + $0x8] sm:$0xff] }
   0x6   :  { %370 = vmatprep.subr.bf16.mxu1 %v369_v6  ;;  %v318_v16 = vld [vmem:[%s502_s4] ss:$0 sm:$0xff]  ;;  %v125_v21 = vld [vmem:[%s503_s1 + $0x8] sm:$0xff] }
   0x7   :  { %372 = vmatpush3.bf16.msra.mxu1 %v369_v6  ;;  %378 = vmatprep.subr.bf16.mxu0 %v377_v13  ;;  %v124_v20 = vld [vmem:[%s503_s1] sm:$0xff] }
   0x8   :  { %345 = vmatmul.mubr.msk.f32.vlgmr.msra.gmra.mrb[0].mxu0 %vm42_vm0, %v32_v7  ;;  %374 = vmatprep.subr.bf16.mxu1 %v373_v10  ;;  %v321_v27 = vld [vmem:[%s505_s6] ss:$0 sm:$0xff] }
   0x9   :  { %380 = vmatpush3.bf16.msra.mxu0 %v377_v13  ;;  %362 = vmatprep.mubr.msk.f32.mxu0 %vm42_vm0, %v223_v14 }
   0xb   :  { %376 = vmatpush3.bf16.msra.mxu1 %v373_v10 }
   0xc   :  { %363 = vmatmul.mubr.msk.f32.vlgmr.msra.gmra.mrb[2].mxu0 %vm42_vm0, %v224_v15 }
  0xdb   :  { %v346_v17 = vpop.f32.mrb[0].mxu0 }
  0xdc   :  { %v121_v18 = vadd.f32 %v346_v17, %v318_v16  ;;  %v115_v19 = vpop.f32.mrb[1].mxu0 }
  0xdd   :  { %v116_v22 = vadd.f32 %v318_v16, %v115_v19 }
  0xde   :  { %v127_v24 = vadd.f32 %v125_v21, %v121_v18 }
  0xdf   :  { %v126_v23 = vadd.f32 %v124_v20, %v116_v22  ;;  %v364_v25 = vpop.f32.mrb[2].mxu0 }
  0xe0   :  { %v299_v26 = vpop.f32.mrb[3].mxu0  ;;  %309 = vst [vmem:[%s504_s9 + $0x8] sm:$0xff] %v364_v25 }
  0xe1   :  { %355 = vmatprep.mubr.msk.f32.mxu1 %vm139_vm1, %v126_v23  ;;  %308 = vst [vmem:[%s504_s9] sm:$0xff] %v299_v26 }
  0xe2   :  { %356 = vmatmul.mubr.msk.f32.vlgmr.msra.gmra.mrb[0].mxu1 %vm139_vm1, %v127_v24 }
 0x1b5   :  { %v357_v28 = vpop.f32.mrb[0].mxu1 }
 0x1b6   :  { %v218_v29 = vadd.f32 %v357_v28, %v321_v27  ;;  %v212_v30 = vpop.f32.mrb[1].mxu1 }
 0x1b7   :  { %v213_v31 = vadd.f32 %v321_v27, %v212_v30 }
 0x1b8   :  { %222 = vst.msk [vmem:[%s506_s8 + $0x8] sm:$0xff] %vm42_vm0, %v218_v29 }
 0x1b9   :  { %221 = vst.msk [vmem:[%s506_s8] sm:$0xff] %vm42_vm0, %v213_v31 }

// kernel: _forward_impl.3
= control target key start
LH: loop header
LB: loop body
LE: loop exit
PB: predicated region body
PF: predicated region fallthrough
CT: control target
= control target key end

     0   :  { %s1001_s0 = inlined_call_operand.vmem [shape: s32[8], index: 0, kind: input, shape index: {}]   ;;  %s1002_s1 = inlined_call_operand.vmem [shape: f32[8,8,128], index: 1, kind: input, shape index: {}]   ;;  %s1003_s2 = inlined_call_operand.vmem [shape: f32[8,8,16], index: 2, kind: input, shape index: {}]   ;;  %s1004_s3 = inlined_call_operand.vmem [shape: f32[8,16], index: 3, kind: input, shape index: {}]   ;;  %s1005_s4 = inlined_call_operand.vmem [shape: f32[8,32], index: 4, kind: input, shape index: {}]   ;;  %s1006_s5 = inlined_call_operand.vmem [shape: f32[8,32], index: 5, kind: input, shape index: {}]   ;;  %s1007_s6 = inlined_call_operand.vmem [shape: f32[16,128], index: 6, kind: input, shape index: {}]   ;;  %s1008_s7 = inlined_call_operand.vmem [shape: f32[32,128], index: 7, kind: input, shape index: {}]   ;;  %s1009_s8 = inlined_call_operand.vmem [shape: f32[1,128], index: 8, kind: input, shape index: {}]   ;;  %s1010_s9 = inlined_call_operand.vmem [shape: f32[32,16], index: 9, kind: input, shape index: {}]   ;;  %s1011_s10 = inlined_call_operand.vmem [shape: f32[8,8,16], index: 10, kind: output, shape index: {}]  }
   0x1   :  { %s15_s15 = sshll.u32 %s1001_s0, 4  ;;  %s16_s15 = int_to_ptr.vmem [resolvable:$true] %s15_s15 }
   0x2   :  { %s827_s16 = scalar_lea.vmem %s16_s15, 16  ;;  %p832_p1 = scmp.lt.s32.totalorder %s16_s15, %s16_s15 }
   0x3   :  { %p828_p0 = scmp.ne.s32.totalorder %s16_s15, %s827_s16  ;;  %p833_p2 = scmp.lt.s32.totalorder %s827_s16, %s827_s16 }
   0x5   :  { %p834_p3 = por %p833_p2, %p832_p1 }
   0x7   :  { %p835_p4 = pnand %p834_p3, %p828_p0 }
   0x9   :  { %838 = shalt.err (!%p835_p4)  }
   0xa   :  { %s849_s17 = smov [#allocation7]  }
   0xb   :  { %18 = dma.vmem_to_smem %s16_s15, 16, %s849_s17, [#allocation6] }
   0xc   :  { %843 = dma.done.wait [#allocation6], 16 }
   0xd   :  { %844 = vsyncadd [#allocation6], 4294967280 }
   0xe   :  { %20 = sfence }
   0xf   :  { %s917_s18 = smov 0  }
  0x10 LB: > { %s726_s0 = sadd.s32 4294967295, %s847_s18   ;;  %p730_p5 = scmp.ge.s32.totalorder %s847_s18, 1  ;;  %s847_s18 = sphi %s917_s18, %s26_s18  }
  0x11   : > { %p302_p6 = scmp.lt.s32.totalorder %s847_s18, 9 }
  0x13   : > { %p303_p7 = pnand %p730_p5, %p302_p6 }
  0x14   : > { %p340_p8 = scmp.lt.s32.totalorder (!%p303_p7), %s726_s0, 7  ;;  %p734_p9 = scmp.ne.s32.totalorder (!%p303_p7), %s726_s0, 0 }
  0x15   : > { %306 = sbr.rel (%p303_p7) target bundleno = 1200 (0x4b0), region = 56 }
  0x1c   : > { %s341_s19 = scalar_select %p340_p8, %s726_s0, 7 }
  0x1d   : > { %355 = sbr.rel (%p734_p9) target bundleno = 36 (0x24), region = 60  ;;  %v356_v0 = vld [vmem:[%s1005_s4] sm:$0xff] (!%p734_p9)  ;;  %vm357_vm0 = vcmask (!%p734_p9), 261120   ;;  %vm362_vm1 = vcmask (!%p734_p9), 130048  }
  0x1e   : > { %s925_s20 = sshll.u32 %s341_s19, 3  ;;  %v359_v1 = vld [vmem:[%s1006_s5] sm:$0xff] (!%p734_p9)  ;;  %358 = vst.msk [vmem:[#allocation2] sm:$0xff] (!%p734_p9), %vm357_vm0, %v356_v0 }
  0x1f   : > { %s343_s23 = scalar_lea.vmem %s1002_s1, %s925_s20  ;;  %s347_s26 = scalar_lea.vmem %s1003_s2, %s925_s20  ;;  %v361_v2 = vld [vmem:[%s1004_s3] sm:$0xff] (!%p734_p9)  ;;  %360 = vst.msk [vmem:[#allocation3] sm:$0xff] (!%p734_p9), %vm357_vm0, %v359_v1 }
  0x20   : > { %s351_s29 = scalar_lea.vmem %s1011_s10, %s925_s20  ;;  %363 = vst.msk [vmem:[#allocation4] sm:$0xff] (!%p734_p9), %vm362_vm1, %v361_v2 }
  0x24 PF: > { %s364_s16 = sld [smem:[#allocation7 + %s726_s0]] }
  0x2a   : > { %p735_p10 = scmp.ne.s32.totalorder %s364_s16, 1 }
  0x2b   : > { %v369_v3 = vld [vmem:[%s343_s23] sm:$0xff] (!%p735_p10) }
  0x2c   : > { %368 = sbr.rel (%p735_p10) target bundleno = 51 (0x33), region = 64  ;;  %370 = vst [vmem:[#allocation5] sm:$0xff] (!%p735_p10), %v369_v3 }
  0x33 PF: > { %p736_p11 = scmp.eq.s32.totalorder %s364_s16, 1 }
  0x34   : > { %v376_v4 = vld [vmem:[%s1007_s6] sm:$0xff] (!%p736_p11)  ;;  %v377_v5 = vld [vmem:[%s1007_s6 + $0x8] sm:$0xff] (!%p736_p11)  ;;  %v850_v6 = vmov (!%p736_p11), 0.0|0.0   ;;  %vm851_vm2 = vmmov (!%p736_p11), 0   ;;  %v852_v8 = vmov (!%p736_p11), 0.0   ;;  %v375_v9 = vld [vmem:[#allocation4] sm:$0xff] (!%p736_p11) }
  0x35   : > { %374 = sbr.rel (%p736_p11) target bundleno = 271 (0x10f), region = 68  ;;  %786 = vmatprep.subr.bf16.mxu0 (!%p736_p11), %v850_v6  ;;  %v787_v7 = vpack.c.bf16 (!%p736_p11), %v377_v5, %v376_v4  ;;  %761 = vmatprep.mubr.msk.f32.mxu0 (!%p736_p11), %vm851_vm2, %v852_v8  ;;  %vm378_vm3 = vcmask (!%p736_p11), 130048  }
  0x37   : > { %788 = vmatpush3.bf16.msra.mxu0 (!%p736_p11), %v787_v7 }
  0x3a   : > { %762 = vmatmul.mubr.msk.f32.vlgmr.msra.gmra.mrb[0].mxu0 (!%p736_p11), %vm378_vm3, %v375_v9 }
 0x10d   : > { %v448_v10 = vpop.f32.mrb[0].mxu0 }
 0x10e   : > { %452 = vst [vmem:[#allocation5] sm:$0xff] %v448_v10  ;;  %v763_v11 = vpop.f32.mrb[1].mxu0 }
 0x10f PF: > { %v455_v12 = vld [vmem:[%s1008_s7] sm:$0xff]  ;;  %v456_v13 = vld [vmem:[%s1008_s7 + $0x8] sm:$0xff]  ;;  %v457_v14 = vld [vmem:[%s1008_s7 + $0x10] sm:$0xff]  ;;  %v853_v15 = vmov 0.0|0.0   ;;  %vm854_vm4 = vmmov 0   ;;  %v855_v18 = vmov 0.0  }
 0x110   : > { %789 = vmatprep.subr.bf16.mxu0 %v853_v15  ;;  %v790_v16 = vpack.c.bf16 %v456_v13, %v455_v12  ;;  %v458_v17 = vld [vmem:[%s1008_s7 + $0x18] sm:$0xff]  ;;  %772 = vmatprep.mubr.msk.f32.mxu0 %vm854_vm4, %v855_v18  ;;  %v454_v20 = vld [vmem:[#allocation2] sm:$0xff]  ;;  %vm459_vm5 = vcmask 261120   ;;  %s856_s14 = smov 64   ;;  %v549_v28 = vld [vmem:[#allocation3] sm:$0xff]  ;;  %s857_s15 = smov 32  }
 0x111   : > { %795 = vmatprep.subr.bf16.mxu1 %v853_v15  ;;  %783 = vmatprep.mubr.msk.f32.mxu1 %vm854_vm4, %v855_v18  ;;  %v793_v19 = vpack.c.bf16 %v458_v17, %v457_v14  ;;  %v739_v23 = vld [vmem:[%s1009_s8] ss:$0 sm:$0xff]  ;;  %v572_v40 = vld [vmem:[%s1010_s9 + $0x8] sm:$0xff]  ;;  %v573_v41 = vld [vmem:[%s1010_s9 + $0x10] sm:$0xff]  ;;  %s858_s25 = smov 96   ;;  %vm658_vm6 = vcmask 130048  }
 0x112   : > { %791 = vmatpush3.bf16.msra.mxu0 %v790_v16  ;;  %v571_v39 = vld [vmem:[%s1010_s9] sm:$0xff]  ;;  %v574_v43 = vld [vmem:[%s1010_s9 + $0x18] sm:$0xff] }
 0x113   : > { %792 = vmatprep.subr.bf16.mxu0 %v853_v15  ;;  %v796_v42 = vpack.c.bf16 %v572_v40, %v571_v39  ;;  %v799_v44 = vpack.c.bf16 %v574_v43, %v573_v41  ;;  %v575_v50 = vld [vmem:[%s347_s26] sm:$0xff] }
 0x115   : > { %v453_v21 = vld [vmem:[#allocation5] sm:$0xff]  ;;  %797 = vmatpush3.bf16.msra.mxu1 %v796_v42 }
 0x116   : > { %794 = vmatpush3.bf16.msra.mxu0 %v793_v19  ;;  %798 = vmatprep.subr.bf16.mxu1 %v853_v15 }
 0x119   : > { %773 = vmatmul.mubr.msk.f32.vlgmr.msra.gmra.mrb[0].mxu0 %vm459_vm5, %v454_v20  ;;  %800 = vmatpush3.bf16.msra.mxu1 %v799_v44 }
 0x1ec   : > { %v529_v22 = vpop.f32.mrb[0].mxu0 }
 0x1ed   : > { %v533_v24 = vadd.f32 %v529_v22, %v453_v21  ;;  %v774_v25 = vpop.f32.mrb[1].mxu0 }
 0x1ef   : > { %v541_v26 = vadd.f32 %v739_v23, %v533_v24 }
 0x1f1   : > { %819 = vtanh.f32 %v541_v26  ;;  %v740_v29 = vmul.f32 -1.442695, %v541_v26 }
 0x1f3   : > { %821 = vpow2.f32 %v740_v29 }
 0x1fb   : > { %v820_v27 = vpop.eup %819 }
 0x1fc   : > { %556 = vrot.lane.b32.xlu0 %v820_v27, %s856_s14 }
 0x1fd   : > { %v822_v30 = vpop.eup %821 }
 0x1fe   : > { %v545_v31 = vadd.f32 1.0, %v822_v30 }
 0x200   : > { %551 = vrot.lane.b32.xlu0 %v549_v28, %s857_s15  ;;  %823 = vrcp.f32 %v545_v31 }
 0x20a   : > { %v824_v32 = vpop.eup %823 }
 0x26e   : > { %v557_v33 = vpop.permute.xlu0 %556 }
 0x26f   : > { %v559_v34 = vmul.f32 %v824_v32, %v557_v33 }
 0x271   : > { %561 = vrot.lane.b32.xlu1 %v559_v34, %s857_s15 }
 0x272   : > { %v552_v35 = vpop.permute.xlu0 %551 }
 0x273   : > { %v554_v36 = vmul.f32 %v824_v32, %v552_v35 }
 0x2e3   : > { %v562_v37 = vpop.permute.xlu1 %561 }
 0x2e4   : > { %v564_v38 = vadd.f32 %v562_v37, %v554_v36 }
 0x2e6   : > { %825 = vtanh.f32 %v564_v38 }
 0x2f0   : > { %v826_v45 = vpop.eup %825 }
 0x2f1   : > { %567 = vrot.lane.b32.xlu1 %v826_v45, %s856_s14 }
 0x2f5   : > { %654 = vrot.lane.b32.xlu1 %v564_v38, %s858_s25 }
 0x363   : > { %v568_v46 = vpop.permute.xlu1 %567 }
 0x364   : > { %v570_v47 = vmul.f32 %v824_v32, %v568_v46 }
 0x366   : > { %577 = vrot.lane.b32.xlu0 %v570_v47, %s857_s15 }
 0x367   : > { %v655_v48 = vpop.permute.xlu1 %654 }
 0x368   : > { %657 = vst.msk [vmem:[#allocation3] sm:$0xff] %vm459_vm5, %v655_v48 }
 0x3d8   : > { %v578_v49 = vpop.permute.xlu0 %577 }
 0x3d9   : > { %652 = vst.msk [vmem:[#allocation2] sm:$0xff] %vm459_vm5, %v578_v49  ;;  %784 = vmatmul.mubr.msk.f32.vlgmr.msra.gmra.mrb[0].mxu1 %vm459_vm5, %v578_v49 }
 0x4ac   : > { %v647_v51 = vpop.f32.mrb[0].mxu1 }
 0x4ad   : > { %v648_v52 = vadd.f32 %v647_v51, %v575_v50  ;;  %v785_v53 = vpop.f32.mrb[1].mxu1 }
 0x4af   : > { %659 = vst.msk [vmem:[#allocation4] sm:$0xff] %vm658_vm6, %v648_v52  ;;  %660 = vst.msk [vmem:[%s351_s29] sm:$0xff] %vm658_vm6, %v648_v52 }
 0x4b0 PF: > { %s26_s18 = sadd.s32 1, %s847_s18  }
 0x4b1   : > { %p23_p12 = scmp.ge.s32.totalorder %s26_s18, 10  }
 0x4b3   :  { %25 = sbr.rel (!%p23_p12) target bundleno = 16 (0x10), region = 101 }

</bundles_post_ra>
